<compile_context>
chip_gen: v5e
topology: v5e:2x2
jax: 0.10.0
libtpu: 0.0.40
codegen_flags: <defaults>
</compile_context>

<pallas_src>
import functools

import jax
import jax.numpy as jnp
from jax.experimental import pallas as pl
from jax.experimental.pallas import tpu as pltpu


def _odefunc_kernel(yT_ref, w1_ref, b1_ref, w2T_ref, b2_ref, oT_ref):
    # yT_ref : [2, TB]    batch on lanes (compute dtype)
    # w1_ref : [Hp, 2]    Linear(2, H).weight, zero-padded rows H..Hp
    # b1_ref : [Hp, 1]
    # w2T_ref: [2, Hp]    Linear(H, 2).weight, zero-padded cols H..Hp
    # b2_ref : [2, 1]     (f32)
    # oT_ref : [2, TB]    (f32)
    y0 = yT_ref[0:1, :]                                   # [1, TB]
    y1 = yT_ref[1:2, :]                                   # [1, TB]

    # Layer 1 (K = 2): two VPU broadcast-FMAs, bias folded in, tanh on EUP.
    h = jnp.tanh(w1_ref[:, 0:1] * y0 + w1_ref[:, 1:2] * y1 + b1_ref[...])  # [Hp, TB]

    # Layer 2 (K = Hp): single MXU matmul, f32 accumulation.
    o = jnp.dot(w2T_ref[...], h, preferred_element_type=jnp.float32)       # [2, TB]

    oT_ref[...] = (o + b2_ref[...]).astype(oT_ref.dtype)


def _round_up(x, m):
    return (x + m - 1) // m * m


def _cdiv(a, b):
    return (a + b - 1) // b


@functools.partial(jax.jit, static_argnames=("block_b", "compute_dtype"))
def odefunc_forward(t, y, w1, b1, w2, b2, *, block_b=16384,
                    compute_dtype=jnp.float32):
    """Pallas implementation of ODEFunc.forward(t, y).

    t is unused (API parity with the PyTorch module).
    y:  [B, 2] float32
    w1: [50, 2], b1: [50], w2: [2, 50], b2: [2]  (PyTorch native layouts)
    compute_dtype: jnp.float32 (all gens) or jnp.bfloat16 (v6e / v7x only).
    Returns [B, 2] float32.
    """
    del t
    B = y.shape[0]
    H, F_in = w1.shape          # 50, 2
    F_out = w2.shape[0]         # 2
    Hp = _round_up(H, 16)       # 50 -> 64: full sublane tiles, clean MXU K

    # --- batch padding / tiling -------------------------------------------
    # Pad to a multiple of 128 first, then split into near-equal 128-aligned
    # tiles so a B just above block_b does not waste nearly a full tile.
    B128 = _round_up(B, 128)
    grid_n = _cdiv(B128, block_b)
    TB = _round_up(_cdiv(B128, grid_n), 128)
    B_pad = TB * grid_n

    # --- operand prep (lane-dense y^T, column-form / padded params) --------
    yT = jnp.pad(y, ((0, B_pad - B), (0, 0))).T.astype(compute_dtype)    # [2, B_pad]
    w1_p = jnp.pad(w1, ((0, Hp - H), (0, 0))).astype(compute_dtype)      # [Hp, 2]
    b1_p = jnp.pad(b1, (0, Hp - H)).reshape(Hp, 1).astype(compute_dtype)  # [Hp, 1]
    w2T_p = jnp.pad(w2, ((0, 0), (0, Hp - H))).astype(compute_dtype)     # [2, Hp]
    b2_c = b2.reshape(F_out, 1).astype(jnp.float32)                      # [2, 1]

    itemsize = jnp.dtype(compute_dtype).itemsize
    cost = pl.CostEstimate(
        flops=2 * B_pad * Hp * (F_in + F_out),
        transcendentals=B_pad * Hp,
        bytes_accessed=(itemsize * (B_pad * F_in + Hp * (F_in + F_out) + Hp)
                        + 4 * (B_pad * F_out + F_out)),
    )

    outT = pl.pallas_call(
        _odefunc_kernel,
        out_shape=jax.ShapeDtypeStruct((F_out, B_pad), jnp.float32),
        grid=(grid_n,),
        in_specs=[
            pl.BlockSpec((F_in, TB), lambda i: (0, i)),     # batch tile
            pl.BlockSpec((Hp, F_in), lambda i: (0, 0)),     # weights stay resident
            pl.BlockSpec((Hp, 1), lambda i: (0, 0)),
            pl.BlockSpec((F_out, Hp), lambda i: (0, 0)),
            pl.BlockSpec((F_out, 1), lambda i: (0, 0)),
        ],
        out_specs=pl.BlockSpec((F_out, TB), lambda i: (0, i)),
        compiler_params=pltpu.CompilerParams(
            dimension_semantics=("parallel",)),
        cost_estimate=cost,
    )(yT, w1_p, b1_p, w2T_p, b2_c)

    return outT[:, :B].T


def init_params(key):
    """Deterministic init matching the PyTorch module:
       weights ~ N(0, 0.1), biases = 0 (PyTorch native layouts)."""
    k1, k2 = jax.random.split(key)
    w1 = 0.1 * jax.random.normal(k1, (50, 2), dtype=jnp.float32)  # Linear(2,50).weight
    b1 = jnp.zeros((50,), dtype=jnp.float32)
    w2 = 0.1 * jax.random.normal(k2, (2, 50), dtype=jnp.float32)  # Linear(50,2).weight
    b2 = jnp.zeros((2,), dtype=jnp.float32)
    return w1, b1, w2, b2


if __name__ == "__main__":
    key = jax.random.PRNGKey(0)
    pkey, ykey = jax.random.split(key)
    w1, b1, w2, b2 = init_params(pkey)

    B = 8
    y = jax.random.normal(ykey, (B, 2), dtype=jnp.float32)
    t = jnp.float32(0.0)  # unused, like in the PyTorch forward

    out = jax.block_until_ready(odefunc_forward(t, y, w1, b1, w2, b2))

    # Pure-JAX reference (PyTorch semantics: x @ W.T + b).
    ref = jnp.tanh(y @ w1.T + b1) @ w2.T + b2
    assert out.shape == (B, 2)
    assert jnp.allclose(out, ref, atol=1e-5, rtol=1e-5)

    print("KERNEL_OK")
</pallas_src>

<mosaic_0001>
module attributes {stable_mosaic.version = 11 : i64} {
  func.func @_odefunc_kernel(%arg0: i32, %arg1: memref<2x128xf32, #tpu.memory_space<vmem>>, %arg2: memref<64x2xf32, #tpu.memory_space<vmem>>, %arg3: memref<64x1xf32, #tpu.memory_space<vmem>>, %arg4: memref<2x64xf32, #tpu.memory_space<vmem>>, %arg5: memref<2x1xf32, #tpu.memory_space<vmem>>, %arg6: memref<2x128xf32, #tpu.memory_space<vmem>>) attributes {dimension_semantics = [#tpu.dimension_semantics<parallel>], iteration_bounds = array<i64: 1>, scalar_prefetch = 0 : i64, scratch_operands = 0 : i64, tpu.core_type = #tpu.core_type<tc>, window_params = [{transform_indices = @transform_0, window_bounds = array<i64: 2, 128>}, {pipeline_mode = #tpu.pipeline_mode<synchronous>, transform_indices = @transform_1, window_bounds = array<i64: 64, 2>}, {pipeline_mode = #tpu.pipeline_mode<synchronous>, transform_indices = @transform_2, window_bounds = array<i64: 64, 1>}, {pipeline_mode = #tpu.pipeline_mode<synchronous>, transform_indices = @transform_3, window_bounds = array<i64: 2, 64>}, {pipeline_mode = #tpu.pipeline_mode<synchronous>, transform_indices = @transform_4, window_bounds = array<i64: 2, 1>}, {transform_indices = @transform_5, window_bounds = array<i64: 2, 128>}]} {
    %c0 = arith.constant 0 : index
    %c0_0 = arith.constant 0 : index
    %0 = vector.load %arg1[%c0, %c0_0] : memref<2x128xf32, #tpu.memory_space<vmem>>, vector<1x128xf32>
    %c1 = arith.constant 1 : index
    %c0_1 = arith.constant 0 : index
    %1 = vector.load %arg1[%c1, %c0_1] : memref<2x128xf32, #tpu.memory_space<vmem>>, vector<1x128xf32>
    %c0_2 = arith.constant 0 : index
    %c0_3 = arith.constant 0 : index
    %2 = vector.load %arg2[%c0_2, %c0_3] : memref<64x2xf32, #tpu.memory_space<vmem>>, vector<64x1xf32>
    %3 = vector.broadcast %2 : vector<64x1xf32> to vector<64x128xf32>
    %4 = vector.broadcast %0 : vector<1x128xf32> to vector<64x128xf32>
    %5 = arith.mulf %3, %4 : vector<64x128xf32>
    %c0_4 = arith.constant 0 : index
    %c1_5 = arith.constant 1 : index
    %6 = vector.load %arg2[%c0_4, %c1_5] : memref<64x2xf32, #tpu.memory_space<vmem>>, vector<64x1xf32>
    %7 = vector.broadcast %6 : vector<64x1xf32> to vector<64x128xf32>
    %8 = vector.broadcast %1 : vector<1x128xf32> to vector<64x128xf32>
    %9 = arith.mulf %7, %8 : vector<64x128xf32>
    %10 = arith.addf %5, %9 : vector<64x128xf32>
    %c0_6 = arith.constant 0 : index
    %c0_7 = arith.constant 0 : index
    %11 = vector.load %arg3[%c0_6, %c0_7] : memref<64x1xf32, #tpu.memory_space<vmem>>, vector<64x1xf32>
    %12 = vector.broadcast %11 : vector<64x1xf32> to vector<64x128xf32>
    %13 = arith.addf %10, %12 : vector<64x128xf32>
    %14 = math.tanh %13 : vector<64x128xf32>
    %c0_8 = arith.constant 0 : index
    %c0_9 = arith.constant 0 : index
    %15 = vector.load %arg4[%c0_8, %c0_9] : memref<2x64xf32, #tpu.memory_space<vmem>>, vector<2x64xf32>
    %cst = arith.constant dense<0.000000e+00> : vector<2x128xf32>
    %16 = tpu.matmul %15, %14, %cst {dimension_numbers = #tpu.dot_dimension_numbers<[1], [0], [0], [1], [0, 0, 1, 1], [], []>} : vector<2x64xf32>, vector<64x128xf32>, vector<2x128xf32> -> vector<2x128xf32>
    %c0_10 = arith.constant 0 : index
    %c0_11 = arith.constant 0 : index
    %17 = vector.load %arg5[%c0_10, %c0_11] : memref<2x1xf32, #tpu.memory_space<vmem>>, vector<2x1xf32>
    %18 = vector.broadcast %17 : vector<2x1xf32> to vector<2x128xf32>
    %19 = arith.addf %16, %18 : vector<2x128xf32>
    %c0_12 = arith.constant 0 : index
    %c0_13 = arith.constant 0 : index
    %20 = vector.load %arg6[%c0_12, %c0_13] : memref<2x128xf32, #tpu.memory_space<vmem>>, vector<2x128xf32>
    tpu.vector_store %arg6[%c0_12, %c0_13], %19 {strides = array<i32>} : memref<2x128xf32, #tpu.memory_space<vmem>>, vector<2x128xf32>,
    return
  }
  func.func @transform_0(%arg0: i32) -> (i32, i32) {
    %c0_i32 = arith.constant 0 : i32
    %c0_i32_0 = arith.constant 0 : i32
    return %c0_i32, %arg0 : i32, i32
  }
  func.func @transform_1(%arg0: i32) -> (i32, i32) {
    %c0_i32 = arith.constant 0 : i32
    %c0_i32_0 = arith.constant 0 : i32
    %c0_i32_1 = arith.constant 0 : i32
    return %c0_i32, %c0_i32_0 : i32, i32
  }
  func.func @transform_2(%arg0: i32) -> (i32, i32) {
    %c0_i32 = arith.constant 0 : i32
    %c0_i32_0 = arith.constant 0 : i32
    %c0_i32_1 = arith.constant 0 : i32
    return %c0_i32, %c0_i32_0 : i32, i32
  }
  func.func @transform_3(%arg0: i32) -> (i32, i32) {
    %c0_i32 = arith.constant 0 : i32
    %c0_i32_0 = arith.constant 0 : i32
    %c0_i32_1 = arith.constant 0 : i32
    return %c0_i32, %c0_i32_0 : i32, i32
  }
  func.func @transform_4(%arg0: i32) -> (i32, i32) {
    %c0_i32 = arith.constant 0 : i32
    %c0_i32_0 = arith.constant 0 : i32
    %c0_i32_1 = arith.constant 0 : i32
    return %c0_i32, %c0_i32_0 : i32, i32
  }
  func.func @transform_5(%arg0: i32) -> (i32, i32) {
    %c0_i32 = arith.constant 0 : i32
    %c0_i32_0 = arith.constant 0 : i32
    return %c0_i32, %arg0 : i32, i32
  }
}

</mosaic_0001>

<bundles_post_ra>
// kernel: odefunc_forward.1
= control target key start
LH: loop header
LB: loop body
LE: loop exit
PB: predicated region body
PF: predicated region fallthrough
CT: control target
= control target key end

     0   :  { %v258_v0 = vmov 0   ;;  %v259_v4 = vmov 1   ;;  %vm199_vm0 = vcmask 523264   ;;  %s353_s1 = inlined_call_operand.vmem [shape: f32[64,2], index: 1, kind: input, shape index: {}]   ;;  %s354_s0 = inlined_call_operand.vmem [shape: f32[2,128], index: 0, kind: input, shape index: {}]   ;;  %s355_s2 = inlined_call_operand.vmem [shape: f32[64,1], index: 2, kind: input, shape index: {}]   ;;  %s356_s4 = inlined_call_operand.vmem [shape: f32[2,1], index: 4, kind: input, shape index: {}]   ;;  %s357_s3 = inlined_call_operand.vmem [shape: f32[2,64], index: 3, kind: input, shape index: {}]   ;;  %s358_s5 = inlined_call_operand.vmem [shape: f32[2,128], index: 5, kind: output, shape index: {}]  }
   0x1   :  { %235 = vset.pattern.permute.xlu2 %v258_v0  ;;  %233 = vset.pattern.permute.xlu1 %v258_v0  ;;  %v29_v1 = vld [vmem:[%s353_s1 + $0x38] sm:$0xff]  ;;  %v28_v2 = vld [vmem:[%s353_s1 + $0x30] sm:$0xff]  ;;  %v27_v3 = vld [vmem:[%s353_s1 + $0x28] sm:$0xff] }
   0x2   :  { %231 = vset.pattern.permute.xlu0 %v258_v0  ;;  %62 = vperm.xlu1 %233, %v28_v2   ;;  %v26_v5 = vld [vmem:[%s353_s1 + $0x20] sm:$0xff]  ;;  %v135_v6 = vld [vmem:[%s355_s2 + $0x38] sm:$0xff]  ;;  %v134_v8 = vld [vmem:[%s355_s2 + $0x30] sm:$0xff] }
   0x3   :  { %67 = vperm.xlu0 %231, %v29_v1   ;;  %57 = vperm.xlu2 %235, %v27_v3   ;;  %v25_v7 = vld [vmem:[%s353_s1 + $0x18] sm:$0xff]  ;;  %v24_v9 = vld [vmem:[%s353_s1 + $0x10] sm:$0xff]  ;;  %v133_v10 = vld [vmem:[%s355_s2 + $0x28] sm:$0xff] }
   0x4   :  { %v23_v11 = vld [vmem:[%s353_s1 + $0x8] sm:$0xff]  ;;  %v132_v12 = vld [vmem:[%s355_s2 + $0x20] sm:$0xff]  ;;  %v131_v14 = vld [vmem:[%s355_s2 + $0x18] sm:$0xff] }
   0x5   :  { %v22_v13 = vld [vmem:[%s353_s1] sm:$0xff]  ;;  %v130_v15 = vld [vmem:[%s355_s2 + $0x10] sm:$0xff]  ;;  %v129_v17 = vld [vmem:[%s355_s2 + $0x8] sm:$0xff] }
   0x6   :  { %v128_v16 = vld [vmem:[%s355_s2] sm:$0xff] }
   0x7   :  { %v193_v18 = vld [vmem:[%s356_s4] sm:$0x3] }
   0x8   :  { %v241_v26 = vld [vmem:[%s354_s0 + $0x1] ss:$0 sm:$0xff]  ;;  %v240_v27 = vld [vmem:[%s354_s0] ss:$0 sm:$0xff] }
   0xa   :  { %234 = vset.pattern.permute.xlu1 %v259_v4 }
   0xb   :  { %232 = vset.pattern.permute.xlu0 %v259_v4  ;;  %236 = vset.pattern.permute.xlu2 %v259_v4 }
   0xc   :  { %108 = vperm.xlu0 %232, %v29_v1   ;;  %104 = vperm.xlu1 %234, %v28_v2  }
   0xd   :  { %100 = vperm.xlu2 %236, %v27_v3  }
  0x14   :  { %237 = vset.pattern.permute.xlu1 %v258_v0  ;;  %96 = vperm.xlu0 %232, %v26_v5  }
  0x15   :  { %238 = vset.pattern.permute.xlu2 %v258_v0  ;;  %173 = vperm.xlu1 %237, %v135_v6  }
  0x16   :  { %52 = vperm.xlu2 %238, %v26_v5  }
  0x1c   :  { %92 = vperm.xlu0 %232, %v25_v7  }
  0x1d   :  { %168 = vperm.xlu1 %237, %v134_v8  }
  0x1e   :  { %47 = vperm.xlu2 %238, %v25_v7  }
  0x24   :  { %88 = vperm.xlu0 %232, %v24_v9  }
  0x25   :  { %163 = vperm.xlu1 %237, %v133_v10  }
  0x26   :  { %42 = vperm.xlu2 %238, %v24_v9  }
  0x2c   :  { %84 = vperm.xlu0 %232, %v23_v11  }
  0x2d   :  { %158 = vperm.xlu1 %237, %v132_v12  }
  0x2e   :  { %37 = vperm.xlu2 %238, %v23_v11  }
  0x34   :  { %80 = vperm.xlu0 %232, %v22_v13  }
  0x35   :  { %153 = vperm.xlu1 %237, %v131_v14  }
  0x36   :  { %32 = vperm.xlu2 %238, %v22_v13  }
  0x3c   :  { %239 = vset.pattern.permute.xlu0 %v258_v0 }
  0x3d   :  { %148 = vperm.xlu1 %237, %v130_v15   ;;  %138 = vperm.xlu0 %239, %v128_v16  }
  0x3e   :  { %143 = vperm.xlu2 %238, %v129_v17  }
  0x45   :  { %196 = vperm.xlu1 %237, %v193_v18  }
  0x5d   :  { %v58_v19 = vpop.permute.xlu2 %57 }
  0x5e   :  { %v76_v43 = vmul.f32 %v240_v27, %v58_v19 }
  0x67   :  { %v101_v20 = vpop.permute.xlu2 %100 }
  0x68   :  { %v117_v44 = vmul.f32 %v241_v26, %v101_v20  ;;  %v192_v20 = vld [vmem:[%s357_s3] sm:$0x3] }
  0x6a   :  { %v125_v46 = vadd.f32 %v117_v44, %v76_v43 }
  0x70   :  { %v53_v23 = vpop.permute.xlu2 %52 }
  0x71   :  { %v75_v50 = vmul.f32 %v240_v27, %v53_v23 }
  0x74   :  { %v63_v21 = vpop.permute.xlu1 %62 }
  0x75   :  { %v68_v22 = vpop.permute.xlu0 %67  ;;  %v77_v36 = vmul.f32 %v240_v27, %v63_v21 }
  0x76   :  { %v78_v29 = vmul.f32 %v240_v27, %v68_v22 }
  0x78   :  { %v48_v30 = vpop.permute.xlu2 %47 }
  0x79   :  { %v74_v59 = vmul.f32 %v240_v27, %v48_v30 }
  0x7e   :  { %v109_v24 = vpop.permute.xlu0 %108  ;;  %v105_v25 = vpop.permute.xlu1 %104 }
  0x7f   :  { %v119_v28 = vmul.f32 %v241_v26, %v109_v24  ;;  %v118_v35 = vmul.f32 %v241_v26, %v105_v25 }
  0x80   :  { %v43_v41 = vpop.permute.xlu2 %42 }
  0x81   :  { %v127_v32 = vadd.f32 %v119_v28, %v78_v29  ;;  %v126_v38 = vadd.f32 %v118_v35, %v77_v36  ;;  %v73_v5 = vmul.f32 %v240_v27, %v43_v41 }
  0x86   :  { %v97_v31 = vpop.permute.xlu0 %96 }
  0x87   :  { %v174_v33 = vpop.permute.xlu1 %173  ;;  %v116_v51 = vmul.f32 %v241_v26, %v97_v31 }
  0x88   :  { %v183_v34 = vadd.f32 %v174_v33, %v127_v32  ;;  %v38_v52 = vpop.permute.xlu2 %37 }
  0x89   :  { %v124_v54 = vadd.f32 %v116_v51, %v75_v50  ;;  %v72_v3 = vmul.f32 %v240_v27, %v38_v52 }
  0x8a   :  { %242 = vtanh.f32 %v183_v34 }
  0x8e   :  { %v93_v37 = vpop.permute.xlu0 %92 }
  0x8f   :  { %v169_v39 = vpop.permute.xlu1 %168  ;;  %v115_v58 = vmul.f32 %v241_v26, %v93_v37 }
  0x90   :  { %v243_v40 = vpop.eup %242  ;;  %v182_v42 = vadd.f32 %v169_v39, %v126_v38  ;;  %v33_v60 = vpop.permute.xlu2 %32 }
  0x91   :  { %211 = vmatpush.msra.mxu0 %v243_v40  ;;  %v123_v62 = vadd.f32 %v115_v58, %v74_v59  ;;  %v71_v8 = vmul.f32 %v240_v27, %v33_v60 }
  0x92   :  { %244 = vtanh.f32 %v182_v42 }
  0x96   :  { %v89_v45 = vpop.permute.xlu0 %88 }
  0x97   :  { %v164_v47 = vpop.permute.xlu1 %163  ;;  %v114_v4 = vmul.f32 %v241_v26, %v89_v45 }
  0x98   :  { %v245_v48 = vpop.eup %244  ;;  %v181_v49 = vadd.f32 %v164_v47, %v125_v46  ;;  %v144_v9 = vpop.permute.xlu2 %143 }
  0x99   :  { %212 = vmatpush.msra.mxu0 %v245_v48  ;;  %v122_v10 = vadd.f32 %v114_v4, %v73_v5 }
  0x9a   :  { %246 = vtanh.f32 %v181_v49 }
  0x9e   :  { %v85_v53 = vpop.permute.xlu0 %84 }
  0x9f   :  { %v159_v55 = vpop.permute.xlu1 %158  ;;  %v113_v1 = vmul.f32 %v241_v26, %v85_v53 }
  0xa0   :  { %v247_v56 = vpop.eup %246  ;;  %v180_v57 = vadd.f32 %v159_v55, %v124_v54 }
  0xa1   :  { %213 = vmatpush.msra.mxu0 %v247_v56  ;;  %v121_v6 = vadd.f32 %v113_v1, %v72_v3 }
  0xa2   :  { %248 = vtanh.f32 %v180_v57 }
  0xa3   :  { %v177_v14 = vadd.f32 %v144_v9, %v121_v6 }
  0xa6   :  { %v81_v61 = vpop.permute.xlu0 %80 }
  0xa7   :  { %v154_v63 = vpop.permute.xlu1 %153  ;;  %v112_v7 = vmul.f32 %v241_v26, %v81_v61 }
  0xa8   :  { %v249_v0 = vpop.eup %248  ;;  %v179_v2 = vadd.f32 %v154_v63, %v123_v62 }
  0xa9   :  { %214 = vmatpush.msra.mxu0 %v249_v0  ;;  %v120_v16 = vadd.f32 %v112_v7, %v71_v8 }
  0xaa   :  { %250 = vtanh.f32 %v179_v2 }
  0xaf   :  { %v149_v11 = vpop.permute.xlu1 %148  ;;  %v139_v12 = vpop.permute.xlu0 %138 }
  0xb0   :  { %v251_v13 = vpop.eup %250  ;;  %v178_v15 = vadd.f32 %v149_v11, %v122_v10  ;;  %v176_v17 = vadd.f32 %v139_v12, %v120_v16 }
  0xb1   :  { %215 = vmatpush.msra.mxu0 %v251_v13 }
  0xb2   :  { %252 = vtanh.f32 %v178_v15 }
  0xb3   :  { %254 = vtanh.f32 %v177_v14 }
  0xb4   :  { %256 = vtanh.f32 %v176_v17 }
  0xb7   :  { %v197_v22 = vpop.permute.xlu1 %196 }
  0xb8   :  { %v253_v18 = vpop.eup %252 }
  0xb9   :  { %216 = vmatpush.msra.mxu0 %v253_v18  ;;  %v255_v19 = vpop.eup %254 }
  0xba   :  { %v257_v21 = vpop.eup %256 }
  0xbb   :  { %217 = vmatpush.msra.mxu0 %v255_v19 }
  0xbd   :  { %218 = vmatpush.msra.mxu0 %v257_v21 }
  0xbe   :  { %228 = vmatmul.msk.f32.vlgmr.msra.gmra.mxu0 %vm199_vm0, %v192_v20 }
 0x13b   :  { %v220_v23 = vpop.f32.mrf.mxu0 }
 0x13c   :  { %v221_v24 = vadd.f32 %v220_v23, %v197_v22 }
 0x13e   :  { %223 = vst [vmem:[%s358_s5] sm:$0x3] %v221_v24 }

</bundles_post_ra>
